<compile_context>
chip_gen: v7x
topology: tpu7x:2x2x1
jax: 0.10.0
libtpu: 0.0.40
codegen_flags: <defaults>
</compile_context>

<pallas_src>
import functools

import jax
import jax.numpy as jnp
from jax.experimental import pallas as pl
from jax.experimental.pallas import tpu as pltpu


def _round_up(x, m):
    return ((x + m - 1) // m) * m


def _vmem_capacity_bytes():
    """Best-effort physical VMEM query; conservative (v7x-sized) fallback."""
    try:
        info = pltpu.get_tpu_info()
        cap = getattr(info, "vmem_capacity_bytes", None)
        if cap is None:
            return 64 * 1024 * 1024
        return int(cap)
    except Exception:
        return 64 * 1024 * 1024


def _min_margin_kernel(bc_row_ref, bc_col_ref, lab_row_ref, lab_col_ref,
                       sum_ref, cnt_ref, *, one_minus_margin, tile,
                       mask_row_pad):
    i = pl.program_id(0)   # row-tile index  ("parallel")
    j = pl.program_id(1)   # col-tile index  ("arbitrary", innermost)

    # Output blocks depend only on i -> resident across the whole j loop.
    @pl.when(j == 0)
    def _init():
        sum_ref[...] = jnp.zeros_like(sum_ref)
        cnt_ref[...] = jnp.zeros_like(cnt_ref)

    def _accumulate(extra_mask):
        bc_r = bc_row_ref[...]                                   # (TB, D)
        bc_c = bc_col_ref[...]                                   # (TB, D)
        # Contract the feature axes of both operands directly; no bc.T
        # transpose / extra VMEM copy before the MXU (f32 accumulation).
        gram = jax.lax.dot_general(
            bc_r, bc_c,
            dimension_numbers=(((1,), (1,)), ((), ())),
            preferred_element_type=jnp.float32)                  # (TB, TB) f32
        losses = one_minus_margin - gram                         # folded 1 - margin

        lab_r = lab_row_ref[...]                                 # (TB, 1) int32
        lab_c = lab_col_ref[...]                                 # (1, TB) int32
        valid = jnp.logical_and(lab_r != lab_c, losses > 0.0)    # (TB, TB)
        if mask_row_pad:
            # Padded rows carry label -1 (only present on the last row tile);
            # cheap (TB,1) compare broadcast, emitted only when padding exists.
            valid = jnp.logical_and(valid, lab_r >= 0)
        valid = extra_mask(valid)
        valid_f = valid.astype(jnp.float32)

        # Per-lane partial reductions (cheap sublane reduce); the final 128-wide
        # lane reduce happens once, outside the kernel.
        sum_ref[...] += jnp.sum(losses * valid_f, axis=0).reshape(1, 1, tile)
        cnt_ref[...] += jnp.sum(valid_f, axis=0).reshape(1, 1, tile)

    # Strictly-lower tiles: every element already satisfies g_row > g_col, so
    # no iota / triangle math at all.
    @pl.when(i > j)
    def _off_diag():
        _accumulate(lambda v: v)

    # Diagonal tiles: strict lower triangle via a purely LOCAL r > c compare.
    @pl.when(i == j)
    def _diag():
        def _tri(v):
            r = jax.lax.broadcasted_iota(jnp.int32, (tile, tile), 0)
            c = jax.lax.broadcasted_iota(jnp.int32, (tile, tile), 1)
            return jnp.logical_and(v, r > c)
        _accumulate(_tri)

    # Strictly-upper tiles (i < j) hold no strict-lower-triangle pairs: no MXU
    # work, no mask math, and (via the min(i, j) index-map clamp) no col DMA.


def minimum_margin_loss(centers, labels, margin=0.6, *, tile=None,
                        use_bf16_gram=True):
    """JAX/Pallas equivalent of MinimumMargin.forward(centers, labels).

    use_bf16_gram=True (default) computes the Gram with bf16 inputs and f32
    MXU accumulation; set False for exact f32 parity with the PyTorch module.
    """
    labels = labels.astype(jnp.int32)
    compute_dtype = jnp.bfloat16 if use_bf16_gram else jnp.float32

    batch_centers = centers[labels, :].astype(compute_dtype)     # [B, D]
    B, D = batch_centers.shape
    bytes_per_elem = jnp.dtype(compute_dtype).itemsize

    # Generation-aware tile / scoped-VMEM selection.
    vmem_cap = _vmem_capacity_bytes()
    if vmem_cap >= 96 * 1024 * 1024:
        # v5e / v6e: 128 MiB physical VMEM -> bigger tiles, higher scoped limit.
        tb_cap, vmem_limit = 512, 64 * 1024 * 1024
    else:
        # v7x: 64 MiB physical VMEM -> keep tiles smaller unless bf16 / small D.
        tb_cap = 512 if (use_bf16_gram and D <= 2048) else 256
        vmem_limit = 48 * 1024 * 1024

    def _footprint(tb):
        inputs = 2 * 2 * tb * D * bytes_per_elem   # row+col tiles, double-buffered
        temps = 4 * tb * tb * 4                    # gram / losses / mask f32 temps
        return inputs + temps

    if tile is None:
        TB = _round_up(min(tb_cap, _round_up(B, 128)), 128)
        while TB > 128 and _footprint(TB) > int(0.75 * vmem_limit):
            TB -= 128
    else:
        TB = _round_up(min(int(tile), _round_up(B, 128)), 128)

    B_pad = _round_up(B, TB)
    n_t = B_pad // TB

    if B_pad != B:
        batch_centers = jnp.pad(batch_centers, ((0, B_pad - B), (0, 0)))
        labels = jnp.pad(labels, (0, B_pad - B), constant_values=-1)
    lab_rows = labels.reshape(B_pad, 1)
    lab_cols = labels.reshape(1, B_pad)

    kernel = functools.partial(
        _min_margin_kernel,
        one_minus_margin=float(1.0 - margin),
        tile=TB,
        mask_row_pad=(B_pad != B),
    )

    sums, cnts = pl.pallas_call(
        kernel,
        out_shape=(
            jax.ShapeDtypeStruct((n_t, 1, TB), jnp.float32),   # per-lane partial sums
            jax.ShapeDtypeStruct((n_t, 1, TB), jnp.float32),   # per-lane partial counts
        ),
        grid=(n_t, n_t),
        in_specs=[
            # Row tile of batch_centers (constant across j -> fetched once/row).
            pl.BlockSpec((TB, D), lambda i, j: (i, 0)),
            # Col tile: clamp the block index for skipped upper-triangle steps
            # (i < j) so Pallas elides the dead DMA (same index as prev step).
            pl.BlockSpec((TB, D), lambda i, j: (jnp.minimum(i, j), 0)),
            # Row labels.
            pl.BlockSpec((TB, 1), lambda i, j: (i, 0)),
            # Col labels, same clamp.
            pl.BlockSpec((1, TB), lambda i, j: (0, jnp.minimum(i, j))),
        ],
        out_specs=(
            pl.BlockSpec((1, 1, TB), lambda i, j: (i, 0, 0)),
            pl.BlockSpec((1, 1, TB), lambda i, j: (i, 0, 0)),
        ),
        compiler_params=pltpu.CompilerParams(
            dimension_semantics=("parallel", "arbitrary"),
            vmem_limit_bytes=vmem_limit,
        ),
    )(batch_centers, batch_centers, lab_rows, lab_cols)

    sum_l = jnp.sum(sums)
    cnt = jnp.sum(cnts)
    # PyTorch returns 0 when there are no valid pairs; else mean over valid pairs.
    return jnp.where(cnt > 0.0, sum_l / jnp.maximum(cnt, 1.0), jnp.float32(0.0))


def _reference(centers, labels, margin=0.6, gram_dtype=jnp.float32):
    """Pure-JAX reference mirroring the PyTorch forward."""
    bc = centers[labels, :].astype(gram_dtype)
    losses = 1.0 - jnp.dot(bc, bc.T, preferred_element_type=jnp.float32) - margin
    lab = labels.astype(jnp.int32)
    all_pairs = lab[:, None] != lab[None, :]
    b = lab.shape[0]
    tri = jnp.tril(jnp.ones((b, b), dtype=bool), k=-1)
    valid = (all_pairs & tri & (losses > 0.0)).astype(jnp.float32)
    num_valid = jnp.sum(valid)
    return jnp.where(num_valid > 0.0,
                     jnp.sum(losses * valid) / jnp.maximum(num_valid, 1.0),
                     jnp.float32(0.0))


if __name__ == "__main__":
    key = jax.random.PRNGKey(0)
    k_centers, k_labels, k_centers2, k_labels2 = jax.random.split(key, 4)

    # --- Test 1 & 2: small single-tile case (diagonal-tile path + padding). ---
    num_classes, feat_dim, batch = 4, 32, 8
    centers = jax.random.normal(k_centers, (num_classes, feat_dim), dtype=jnp.float32)
    centers = centers / jnp.linalg.norm(centers, axis=1, keepdims=True)
    labels = jax.random.randint(k_labels, (batch,), 0, num_classes, dtype=jnp.int32)

    # Exact f32 path: must match the exact reference.
    out_f32 = jax.block_until_ready(
        minimum_margin_loss(centers, labels, margin=0.6, use_bf16_gram=False))
    ref_f32 = _reference(centers, labels, margin=0.6)
    assert jnp.allclose(out_f32, ref_f32, atol=1e-4, rtol=1e-4), (out_f32, ref_f32)

    # Default bf16-Gram fast path (f32 MXU accumulation) vs a bf16 reference.
    out_bf16 = jax.block_until_ready(minimum_margin_loss(centers, labels, margin=0.6))
    ref_bf16 = _reference(centers, labels, margin=0.6, gram_dtype=jnp.bfloat16)
    assert jnp.allclose(out_bf16, ref_bf16, atol=2e-3, rtol=2e-3), (out_bf16, ref_bf16)

    # --- Test 3: multi-tile case (off-diagonal tiles + skipped upper tiles +
    # min(i,j) DMA clamp + last-row-tile padding), f32 path. ---
    num_classes2, feat_dim2, batch2 = 16, 64, 200
    centers2 = jax.random.normal(k_centers2, (num_classes2, feat_dim2), dtype=jnp.float32)
    centers2 = centers2 / jnp.linalg.norm(centers2, axis=1, keepdims=True)
    labels2 = jax.random.randint(k_labels2, (batch2,), 0, num_classes2, dtype=jnp.int32)

    out_mt = jax.block_until_ready(
        minimum_margin_loss(centers2, labels2, margin=0.6, tile=128,
                            use_bf16_gram=False))
    ref_mt = _reference(centers2, labels2, margin=0.6)
    assert jnp.allclose(out_mt, ref_mt, atol=1e-4, rtol=1e-4), (out_mt, ref_mt)

    print("KERNEL_OK")
</pallas_src>

<mosaic_0001>
module attributes {stable_mosaic.version = 11 : i64} {
  func.func @_min_margin_kernel(%arg0: i32, %arg1: i32, %arg2: memref<128x32xf32, #tpu.memory_space<vmem>>, %arg3: memref<128x32xf32, #tpu.memory_space<vmem>>, %arg4: memref<128x1xi32, #tpu.memory_space<vmem>>, %arg5: memref<1x128xi32, #tpu.memory_space<vmem>>, %arg6: memref<1x1x128xf32, #tpu.memory_space<vmem>>, %arg7: memref<1x1x128xf32, #tpu.memory_space<vmem>>) attributes {dimension_semantics = [#tpu.dimension_semantics<parallel>, #tpu.dimension_semantics<arbitrary>], iteration_bounds = array<i64: 1, 1>, scalar_prefetch = 0 : i64, scratch_operands = 0 : i64, tpu.core_type = #tpu.core_type<tc>, window_params = [{transform_indices = @transform_0, window_bounds = array<i64: 128, 32>}, {transform_indices = @transform_1, window_bounds = array<i64: 128, 32>}, {transform_indices = @transform_2, window_bounds = array<i64: 128, 1>}, {transform_indices = @transform_3, window_bounds = array<i64: 1, 128>}, {transform_indices = @transform_4, window_bounds = array<i64: 1, 1, 128>}, {transform_indices = @transform_5, window_bounds = array<i64: 1, 1, 128>}]} {
    %c0_i32 = arith.constant 0 : i32
    %0 = arith.cmpi eq, %arg1, %c0_i32 : i32
    %1 = arith.extui %0 : i1 to i32
    %c0_i32_0 = arith.constant 0 : i32
    %2 = arith.cmpi ne, %1, %c0_i32_0 : i32
    scf.if %2 {
      %cst = arith.constant 0.000000e+00 : f32
      %9 = vector.broadcast %cst : f32 to vector<1x1x128xf32>
      %c0 = arith.constant 0 : index
      %c0_3 = arith.constant 0 : index
      %c0_4 = arith.constant 0 : index
      %10 = vector.load %arg6[%c0, %c0_3, %c0_4] : memref<1x1x128xf32, #tpu.memory_space<vmem>>, vector<1x1x128xf32>
      tpu.vector_store %arg6[%c0, %c0_3, %c0_4], %9 {strides = array<i32>} : memref<1x1x128xf32, #tpu.memory_space<vmem>>, vector<1x1x128xf32>,
      %cst_5 = arith.constant 0.000000e+00 : f32
      %11 = vector.broadcast %cst_5 : f32 to vector<1x1x128xf32>
      %c0_6 = arith.constant 0 : index
      %c0_7 = arith.constant 0 : index
      %c0_8 = arith.constant 0 : index
      %12 = vector.load %arg7[%c0_6, %c0_7, %c0_8] : memref<1x1x128xf32, #tpu.memory_space<vmem>>, vector<1x1x128xf32>
      tpu.vector_store %arg7[%c0_6, %c0_7, %c0_8], %11 {strides = array<i32>} : memref<1x1x128xf32, #tpu.memory_space<vmem>>, vector<1x1x128xf32>,
    } else {
    }
    %3 = arith.cmpi sgt, %arg0, %arg1 : i32
    %4 = arith.extui %3 : i1 to i32
    %c0_i32_1 = arith.constant 0 : i32
    %5 = arith.cmpi ne, %4, %c0_i32_1 : i32
    scf.if %5 {
      %c0 = arith.constant 0 : index
      %c0_3 = arith.constant 0 : index
      %9 = vector.load %arg2[%c0, %c0_3] : memref<128x32xf32, #tpu.memory_space<vmem>>, vector<128x32xf32>
      %c0_4 = arith.constant 0 : index
      %c0_5 = arith.constant 0 : index
      %10 = vector.load %arg3[%c0_4, %c0_5] : memref<128x32xf32, #tpu.memory_space<vmem>>, vector<128x32xf32>
      %cst = arith.constant dense<0.000000e+00> : vector<128x128xf32>
      %11 = tpu.matmul %9, %10, %cst {dimension_numbers = #tpu.dot_dimension_numbers<[1], [1], [0], [0], [0, 0, 1, 0], [], []>} : vector<128x32xf32>, vector<128x32xf32>, vector<128x128xf32> -> vector<128x128xf32>
      %cst_6 = arith.constant 4.000000e-01 : f32
      %12 = vector.broadcast %cst_6 : f32 to vector<128x128xf32>
      %13 = arith.subf %12, %11 : vector<128x128xf32>
      %c0_7 = arith.constant 0 : index
      %c0_8 = arith.constant 0 : index
      %14 = vector.load %arg4[%c0_7, %c0_8] : memref<128x1xi32, #tpu.memory_space<vmem>>, vector<128x1xi32>
      %c0_9 = arith.constant 0 : index
      %c0_10 = arith.constant 0 : index
      %15 = vector.load %arg5[%c0_9, %c0_10] : memref<1x128xi32, #tpu.memory_space<vmem>>, vector<1x128xi32>
      %16 = vector.broadcast %14 : vector<128x1xi32> to vector<128x128xi32>
      %17 = vector.broadcast %15 : vector<1x128xi32> to vector<128x128xi32>
      %18 = arith.cmpi ne, %16, %17 : vector<128x128xi32>
      %cst_11 = arith.constant 0.000000e+00 : f32
      %19 = vector.broadcast %cst_11 : f32 to vector<128x128xf32>
      %20 = arith.cmpf ogt, %13, %19 : vector<128x128xf32>
      %21 = arith.andi %18, %20 : vector<128x128xi1>
      %c0_i32_12 = arith.constant 0 : i32
      %22 = vector.broadcast %c0_i32_12 : i32 to vector<128x1xi32>
      %23 = arith.cmpi sge, %14, %22 : vector<128x1xi32>
      %24 = vector.broadcast %23 : vector<128x1xi1> to vector<128x128xi1>
      %25 = arith.andi %21, %24 : vector<128x128xi1>
      %26 = arith.extui %25 : vector<128x128xi1> to vector<128x128xi32>
      %27 = arith.sitofp %26 : vector<128x128xi32> to vector<128x128xf32>
      %c0_13 = arith.constant 0 : index
      %c0_14 = arith.constant 0 : index
      %c0_15 = arith.constant 0 : index
      %28 = vector.load %arg6[%c0_13, %c0_14, %c0_15] : memref<1x1x128xf32, #tpu.memory_space<vmem>>, vector<1x1x128xf32>
      %29 = arith.mulf %13, %27 : vector<128x128xf32>
      %cst_16 = arith.constant dense<0.000000e+00> : vector<128xf32>
      %30 = vector.multi_reduction <add>, %29, %cst_16 [0] : vector<128x128xf32> to vector<128xf32>
      %31 = vector.shape_cast %30 : vector<128xf32> to vector<1x1x128xf32>
      %32 = arith.addf %28, %31 : vector<1x1x128xf32>
      %c0_17 = arith.constant 0 : index
      %c0_18 = arith.constant 0 : index
      %c0_19 = arith.constant 0 : index
      %33 = vector.load %arg6[%c0_17, %c0_18, %c0_19] : memref<1x1x128xf32, #tpu.memory_space<vmem>>, vector<1x1x128xf32>
      tpu.vector_store %arg6[%c0_17, %c0_18, %c0_19], %32 {strides = array<i32>} : memref<1x1x128xf32, #tpu.memory_space<vmem>>, vector<1x1x128xf32>,
      %c0_20 = arith.constant 0 : index
      %c0_21 = arith.constant 0 : index
      %c0_22 = arith.constant 0 : index
      %34 = vector.load %arg7[%c0_20, %c0_21, %c0_22] : memref<1x1x128xf32, #tpu.memory_space<vmem>>, vector<1x1x128xf32>
      %cst_23 = arith.constant dense<0.000000e+00> : vector<128xf32>
      %35 = vector.multi_reduction <add>, %27, %cst_23 [0] : vector<128x128xf32> to vector<128xf32>
      %36 = vector.shape_cast %35 : vector<128xf32> to vector<1x1x128xf32>
      %37 = arith.addf %34, %36 : vector<1x1x128xf32>
      %c0_24 = arith.constant 0 : index
      %c0_25 = arith.constant 0 : index
      %c0_26 = arith.constant 0 : index
      %38 = vector.load %arg7[%c0_24, %c0_25, %c0_26] : memref<1x1x128xf32, #tpu.memory_space<vmem>>, vector<1x1x128xf32>
      tpu.vector_store %arg7[%c0_24, %c0_25, %c0_26], %37 {strides = array<i32>} : memref<1x1x128xf32, #tpu.memory_space<vmem>>, vector<1x1x128xf32>,
    } else {
    }
    %6 = arith.cmpi eq, %arg0, %arg1 : i32
    %7 = arith.extui %6 : i1 to i32
    %c0_i32_2 = arith.constant 0 : i32
    %8 = arith.cmpi ne, %7, %c0_i32_2 : i32
    scf.if %8 {
      %c0 = arith.constant 0 : index
      %c0_3 = arith.constant 0 : index
      %9 = vector.load %arg2[%c0, %c0_3] : memref<128x32xf32, #tpu.memory_space<vmem>>, vector<128x32xf32>
      %c0_4 = arith.constant 0 : index
      %c0_5 = arith.constant 0 : index
      %10 = vector.load %arg3[%c0_4, %c0_5] : memref<128x32xf32, #tpu.memory_space<vmem>>, vector<128x32xf32>
      %cst = arith.constant dense<0.000000e+00> : vector<128x128xf32>
      %11 = tpu.matmul %9, %10, %cst {dimension_numbers = #tpu.dot_dimension_numbers<[1], [1], [0], [0], [0, 0, 1, 0], [], []>} : vector<128x32xf32>, vector<128x32xf32>, vector<128x128xf32> -> vector<128x128xf32>
      %cst_6 = arith.constant 4.000000e-01 : f32
      %12 = vector.broadcast %cst_6 : f32 to vector<128x128xf32>
      %13 = arith.subf %12, %11 : vector<128x128xf32>
      %c0_7 = arith.constant 0 : index
      %c0_8 = arith.constant 0 : index
      %14 = vector.load %arg4[%c0_7, %c0_8] : memref<128x1xi32, #tpu.memory_space<vmem>>, vector<128x1xi32>
      %c0_9 = arith.constant 0 : index
      %c0_10 = arith.constant 0 : index
      %15 = vector.load %arg5[%c0_9, %c0_10] : memref<1x128xi32, #tpu.memory_space<vmem>>, vector<1x128xi32>
      %16 = vector.broadcast %14 : vector<128x1xi32> to vector<128x128xi32>
      %17 = vector.broadcast %15 : vector<1x128xi32> to vector<128x128xi32>
      %18 = arith.cmpi ne, %16, %17 : vector<128x128xi32>
      %cst_11 = arith.constant 0.000000e+00 : f32
      %19 = vector.broadcast %cst_11 : f32 to vector<128x128xf32>
      %20 = arith.cmpf ogt, %13, %19 : vector<128x128xf32>
      %21 = arith.andi %18, %20 : vector<128x128xi1>
      %c0_i32_12 = arith.constant 0 : i32
      %22 = vector.broadcast %c0_i32_12 : i32 to vector<128x1xi32>
      %23 = arith.cmpi sge, %14, %22 : vector<128x1xi32>
      %24 = vector.broadcast %23 : vector<128x1xi1> to vector<128x128xi1>
      %25 = arith.andi %21, %24 : vector<128x128xi1>
      %26 = tpu.iota {dimensions = array<i32: 0>} : vector<128x128xi32>
      %27 = tpu.iota {dimensions = array<i32: 1>} : vector<128x128xi32>
      %28 = arith.cmpi sgt, %26, %27 : vector<128x128xi32>
      %29 = arith.andi %25, %28 : vector<128x128xi1>
      %30 = arith.extui %29 : vector<128x128xi1> to vector<128x128xi32>
      %31 = arith.sitofp %30 : vector<128x128xi32> to vector<128x128xf32>
      %c0_13 = arith.constant 0 : index
      %c0_14 = arith.constant 0 : index
      %c0_15 = arith.constant 0 : index
      %32 = vector.load %arg6[%c0_13, %c0_14, %c0_15] : memref<1x1x128xf32, #tpu.memory_space<vmem>>, vector<1x1x128xf32>
      %33 = arith.mulf %13, %31 : vector<128x128xf32>
      %cst_16 = arith.constant dense<0.000000e+00> : vector<128xf32>
      %34 = vector.multi_reduction <add>, %33, %cst_16 [0] : vector<128x128xf32> to vector<128xf32>
      %35 = vector.shape_cast %34 : vector<128xf32> to vector<1x1x128xf32>
      %36 = arith.addf %32, %35 : vector<1x1x128xf32>
      %c0_17 = arith.constant 0 : index
      %c0_18 = arith.constant 0 : index
      %c0_19 = arith.constant 0 : index
      %37 = vector.load %arg6[%c0_17, %c0_18, %c0_19] : memref<1x1x128xf32, #tpu.memory_space<vmem>>, vector<1x1x128xf32>
      tpu.vector_store %arg6[%c0_17, %c0_18, %c0_19], %36 {strides = array<i32>} : memref<1x1x128xf32, #tpu.memory_space<vmem>>, vector<1x1x128xf32>,
      %c0_20 = arith.constant 0 : index
      %c0_21 = arith.constant 0 : index
      %c0_22 = arith.constant 0 : index
      %38 = vector.load %arg7[%c0_20, %c0_21, %c0_22] : memref<1x1x128xf32, #tpu.memory_space<vmem>>, vector<1x1x128xf32>
      %cst_23 = arith.constant dense<0.000000e+00> : vector<128xf32>
      %39 = vector.multi_reduction <add>, %31, %cst_23 [0] : vector<128x128xf32> to vector<128xf32>
      %40 = vector.shape_cast %39 : vector<128xf32> to vector<1x1x128xf32>
      %41 = arith.addf %38, %40 : vector<1x1x128xf32>
      %c0_24 = arith.constant 0 : index
      %c0_25 = arith.constant 0 : index
      %c0_26 = arith.constant 0 : index
      %42 = vector.load %arg7[%c0_24, %c0_25, %c0_26] : memref<1x1x128xf32, #tpu.memory_space<vmem>>, vector<1x1x128xf32>
      tpu.vector_store %arg7[%c0_24, %c0_25, %c0_26], %41 {strides = array<i32>} : memref<1x1x128xf32, #tpu.memory_space<vmem>>, vector<1x1x128xf32>,
    } else {
    }
    return
  }
  func.func @transform_0(%arg0: i32, %arg1: i32) -> (i32, i32) {
    %c0_i32 = arith.constant 0 : i32
    %c0_i32_0 = arith.constant 0 : i32
    return %arg0, %c0_i32 : i32, i32
  }
  func.func @transform_1(%arg0: i32, %arg1: i32) -> (i32, i32) {
    %0 = arith.minsi %arg0, %arg1 : i32
    %c0_i32 = arith.constant 0 : i32
    %c0_i32_0 = arith.constant 0 : i32
    return %0, %c0_i32 : i32, i32
  }
  func.func @transform_2(%arg0: i32, %arg1: i32) -> (i32, i32) {
    %c0_i32 = arith.constant 0 : i32
    %c0_i32_0 = arith.constant 0 : i32
    return %arg0, %c0_i32 : i32, i32
  }
  func.func @transform_3(%arg0: i32, %arg1: i32) -> (i32, i32) {
    %0 = arith.minsi %arg0, %arg1 : i32
    %c0_i32 = arith.constant 0 : i32
    %c0_i32_0 = arith.constant 0 : i32
    return %c0_i32, %0 : i32, i32
  }
  func.func @transform_4(%arg0: i32, %arg1: i32) -> (i32, i32, i32) {
    %c0_i32 = arith.constant 0 : i32
    %c0_i32_0 = arith.constant 0 : i32
    %c0_i32_1 = arith.constant 0 : i32
    return %arg0, %c0_i32, %c0_i32_0 : i32, i32, i32
  }
  func.func @transform_5(%arg0: i32, %arg1: i32) -> (i32, i32, i32) {
    %c0_i32 = arith.constant 0 : i32
    %c0_i32_0 = arith.constant 0 : i32
    %c0_i32_1 = arith.constant 0 : i32
    return %arg0, %c0_i32, %c0_i32_0 : i32, i32, i32
  }
}

</mosaic_0001>

<bundles_post_ra>
// kernel: tpu_custom_call.1
= control target key start
LH: loop header
LB: loop body
LE: loop exit
PB: predicated region body
PF: predicated region fallthrough
CT: control target
= control target key end

     0   :  { %11 = vsyncpa [#allocation3], 0  ;;  %vm682_vm0 = vcmask 261120   ;;  %v1648_v6 = vmov 0   ;;  %s2292_s0 = inlined_call_operand.vmem [shape: f32[128,32], index: 0, kind: input, shape index: {}]   ;;  %s2293_s1 = inlined_call_operand.vmem [shape: f32[128,32], index: 1, kind: input, shape index: {}]   ;;  %s2294_s2 = inlined_call_operand.vmem [shape: s32[128,1], index: 2, kind: input, shape index: {}]   ;;  %s2295_s3 = inlined_call_operand.vmem [shape: s32[1,128], index: 3, kind: input, shape index: {}]   ;;  %s2296_s4 = inlined_call_operand.hbm [shape: f32[1,1,128], index: 4, kind: output, shape index: {0}]   ;;  %s2297_s5 = inlined_call_operand.hbm [shape: f32[1,1,128], index: 5, kind: output, shape index: {1}]  }
   0x1   :  { %v666_v0 = vld [vmem:[%s2293_s1] sm:$0xff]  ;;  %v667_v1 = vld [vmem:[%s2293_s1 + $0x8] sm:$0xff]  ;;  %v668_v2 = vld [vmem:[%s2293_s1 + $0x10] sm:$0xff]  ;;  %1598 = vset.pattern.permute.xlu0 %v1648_v6  ;;  %1599 = vset.pattern.permute.xlu1 %v1648_v6 }
   0x2   :  { %v1530_v3 = vpack.c.bf16 %v667_v1, %v666_v0  ;;  %vm1693_vm1 = vmpackc.low %vm682_vm0, %vm682_vm0  ;;  %v669_v5 = vld [vmem:[%s2293_s1 + $0x18] sm:$0xff]  ;;  %v670_v8 = vld [vmem:[%s2293_s1 + $0x20] sm:$0xff] }
   0x3   :  { %v1536_v7 = vpack.c.bf16 %v669_v5, %v668_v2  ;;  %v671_v9 = vld [vmem:[%s2293_s1 + $0x28] sm:$0xff]  ;;  %v940_v10 = vld [vmem:[%s2294_s2] sm:$0xff]  ;;  %v942_v11 = vld [vmem:[%s2294_s2 + $0x10] sm:$0xff] }
   0x4   :  { %1532 = vmatprep.subr.msk.bf16.mxu0 %vm1693_vm1, %v1530_v3  ;;  %1578 = vmatprep.subr.msk.bf16.mxu1 %vm1693_vm1, %v1530_v3  ;;  %vm1057_vm2 = vcmp.ge.s32.totalorder %v940_v10, 0  ;;  %v650_v12 = vld [vmem:[%s2292_s0] sm:$0xff]  ;;  %v941_v14 = vld [vmem:[%s2294_s2 + $0x8] sm:$0xff]  ;;  %v1542_v16 = vpack.c.bf16 %v671_v9, %v670_v8  ;;  %vm1059_vm4 = vcmp.ge.s32.totalorder %v942_v11, 0  ;;  %v943_v17 = vld [vmem:[%s2294_s2 + $0x18] sm:$0xff] }
   0x5   :  { %1535 = vmatpush3.bf16.xpose.msk.msra.mxu0 %vm1693_vm1, %v1530_v3  ;;  %1586 = vmatpush3.bf16.xpose.msk.msra.mxu1 %vm1693_vm1, %v1530_v3  ;;  %v658_v13 = vld [vmem:[%s2292_s0 + $0x40] sm:$0xff]  ;;  %v1073_v15 = vsel %vm1057_vm2, 1, %v1648_v6  ;;  %vm1058_vm3 = vcmp.ge.s32.totalorder %v941_v14, 0  ;;  %v1075_v19 = vsel %vm1059_vm4, 1, %v1648_v6  ;;  %vm1060_vm5 = vcmp.ge.s32.totalorder %v943_v17, 0  ;;  %v672_v20 = vld [vmem:[%s2293_s1 + $0x30] sm:$0xff] }
   0x6   :  { %1538 = vmatprep.subr.msk.bf16.mxu0 %vm1693_vm1, %v1536_v7  ;;  %1579 = vmatprep.subr.msk.bf16.mxu1 %vm1693_vm1, %v1536_v7  ;;  %v1074_v18 = vsel %vm1058_vm3, 1, %v1648_v6  ;;  %v673_v21 = vld [vmem:[%s2293_s1 + $0x38] sm:$0xff]  ;;  %v944_v22 = vld [vmem:[%s2294_s2 + $0x20] sm:$0xff]  ;;  %v1076_v23 = vsel %vm1060_vm5, 1, %v1648_v6  ;;  %v945_v25 = vld [vmem:[%s2294_s2 + $0x28] sm:$0xff] }
   0x7   :  { %958 = vperm.xlu0 %1598, %v940_v10   ;;  %964 = vperm.xlu1 %1599, %v942_v11   ;;  %v1548_v24 = vpack.c.bf16 %v673_v21, %v672_v20  ;;  %vm1061_vm6 = vcmp.ge.s32.totalorder %v944_v22, 0 }
   0x8   :  { %1506 = vmatprep.mubr.msk.f32.mxu0 %vm682_vm0, %v650_v12  ;;  %1518 = vmatprep.mubr.msk.f32.mxu1 %vm682_vm0, %v658_v13 }
   0xb   :  { %961 = vperm.xlu0 %1598, %v941_v14   ;;  %1090 = vperm.xlu1 %1599, %v1073_v15  }
   0xd   :  { %1541 = vmatpush3.bf16.xpose.msk.msra.mxu0 %vm1693_vm1, %v1536_v7  ;;  %1587 = vmatpush3.bf16.xpose.msk.msra.mxu1 %vm1693_vm1, %v1536_v7 }
   0xe   :  { %1544 = vmatprep.subr.msk.bf16.mxu0 %vm1693_vm1, %v1542_v16  ;;  %1580 = vmatprep.subr.msk.bf16.mxu1 %vm1693_vm1, %v1542_v16 }
   0xf   :  { %1093 = vperm.xlu0 %1598, %v1074_v18   ;;  %1096 = vperm.xlu1 %1599, %v1075_v19  }
  0x13   :  { %967 = vperm.xlu0 %1598, %v943_v17   ;;  %1099 = vperm.xlu1 %1599, %v1076_v23  }
  0x14   :  { %12 = vsyncpa [#allocation5], 0  ;;  %v1077_v26 = vsel %vm1061_vm6, 1, %v1648_v6  ;;  %vm1062_vm7 = vcmp.ge.s32.totalorder %v945_v25, 0  ;;  %v674_v27 = vld [vmem:[%s2293_s1 + $0x40] sm:$0xff]  ;;  %v675_v28 = vld [vmem:[%s2293_s1 + $0x48] sm:$0xff] }
  0x15   :  { %1547 = vmatpush3.bf16.xpose.msk.msra.mxu0 %vm1693_vm1, %v1542_v16  ;;  %1588 = vmatpush3.bf16.xpose.msk.msra.mxu1 %vm1693_vm1, %v1542_v16  ;;  %v946_v29 = vld [vmem:[%s2294_s2 + $0x30] sm:$0xff]  ;;  %v1078_v30 = vsel %vm1062_vm7, 1, %v1648_v6  ;;  %v1554_v31 = vpack.c.bf16 %v675_v28, %v674_v27  ;;  %v947_v32 = vld [vmem:[%s2294_s2 + $0x38] sm:$0xff]  ;;  %v948_v36 = vld [vmem:[%s2294_s2 + $0x40] sm:$0xff]  ;;  %v1649_v4 = vmov 0.0   ;;  %s1651_s13 = smov [#allocation2]  }
  0x16   :  { %1550 = vmatprep.subr.msk.bf16.mxu0 %vm1693_vm1, %v1548_v24  ;;  %1581 = vmatprep.subr.msk.bf16.mxu1 %vm1693_vm1, %v1548_v24  ;;  %vm1063_vm8 = vcmp.ge.s32.totalorder %v946_v29, 0  ;;  %vm1064_vm9 = vcmp.ge.s32.totalorder %v947_v32, 0  ;;  %v676_v34 = vld [vmem:[%s2293_s1 + $0x50] sm:$0xff]  ;;  %v677_v35 = vld [vmem:[%s2293_s1 + $0x58] sm:$0xff]  ;;  %vm1065_vm10 = vcmp.ge.s32.totalorder %v948_v36, 0  ;;  %v949_v39 = vld [vmem:[%s2294_s2 + $0x48] sm:$0xff] }
  0x17   :  { %970 = vperm.xlu0 %1598, %v944_v22   ;;  %1102 = vperm.xlu1 %1599, %v1077_v26   ;;  %v1079_v33 = vsel %vm1063_vm8, 1, %v1648_v6  ;;  %v1080_v37 = vsel %vm1064_vm9, 1, %v1648_v6  ;;  %v1560_v38 = vpack.c.bf16 %v677_v35, %v676_v34  ;;  %v1081_v40 = vsel %vm1065_vm10, 1, %v1648_v6  ;;  %v678_v41 = vld [vmem:[%s2293_s1 + $0x60] sm:$0xff]  ;;  %v679_v42 = vld [vmem:[%s2293_s1 + $0x68] sm:$0xff]  ;;  %v950_v43 = vld [vmem:[%s2294_s2 + $0x50] sm:$0xff] }
  0x18   :  { %vm1066_vm11 = vcmp.ge.s32.totalorder %v949_v39, 0  ;;  %v1566_v45 = vpack.c.bf16 %v679_v42, %v678_v41  ;;  %vm1067_vm12 = vcmp.ge.s32.totalorder %v950_v43, 0  ;;  %v951_v46 = vld [vmem:[%s2294_s2 + $0x58] sm:$0xff]  ;;  %v680_v48 = vld [vmem:[%s2293_s1 + $0x70] sm:$0xff]  ;;  %v952_v50 = vld [vmem:[%s2294_s2 + $0x60] sm:$0xff]  ;;  %v1169_v22 = vlaneseq  ;;  %s1322_s14 = sshll.u32 %s1651_s13, 4  ;;  %s2260_s14 = int_to_ptr.vmem [resolvable:$true] %s1322_s14 }
  0x19   :  { %v1082_v44 = vsel %vm1066_vm11, 1, %v1648_v6  ;;  %v1083_v47 = vsel %vm1067_vm12, 1, %v1648_v6  ;;  %vm1068_vm13 = vcmp.ge.s32.totalorder %v951_v46, 0  ;;  %v681_v49 = vld [vmem:[%s2293_s1 + $0x78] sm:$0xff]  ;;  %vm1069_vm14 = vcmp.ge.s32.totalorder %v952_v50, 0  ;;  %v953_v53 = vld [vmem:[%s2294_s2 + $0x68] sm:$0xff] }
  0x1a   :  { %v1084_v51 = vsel %vm1068_vm13, 1, %v1648_v6  ;;  %v1572_v52 = vpack.c.bf16 %v681_v49, %v680_v48  ;;  %v1085_v54 = vsel %vm1069_vm14, 1, %v1648_v6  ;;  %vm1070_vm15 = vcmp.ge.s32.totalorder %v953_v53, 0  ;;  %v954_v55 = vld [vmem:[%s2294_s2 + $0x70] sm:$0xff]  ;;  %v955_v58 = vld [vmem:[%s2294_s2 + $0x78] sm:$0xff]  ;;  %v651_v59 = vld [vmem:[%s2292_s0 + $0x8] sm:$0xff] }
  0x1b   :  { %973 = vperm.xlu0 %1598, %v945_v25   ;;  %1105 = vperm.xlu1 %1599, %v1078_v30   ;;  %v1086_v56 = vsel %vm1070_vm15, 1, %v1648_v6  ;;  %vm1071_vm2 = vcmp.ge.s32.totalorder %v954_v55, 0  ;;  %vm1072_vm3 = vcmp.ge.s32.totalorder %v955_v58, 0  ;;  %v659_v60 = vld [vmem:[%s2292_s0 + $0x48] sm:$0xff]  ;;  %v652_v61 = vld [vmem:[%s2292_s0 + $0x10] sm:$0xff]  ;;  %v653_v0 = vld [vmem:[%s2292_s0 + $0x18] sm:$0xff] }
  0x1c   :  { %v1087_v57 = vsel %vm1071_vm2, 1, %v1648_v6  ;;  %v660_v62 = vld [vmem:[%s2292_s0 + $0x50] sm:$0xff]  ;;  %v1088_v63 = vsel %vm1072_vm3, 1, %v1648_v6  ;;  %v661_v1 = vld [vmem:[%s2292_s0 + $0x58] sm:$0xff]  ;;  %v654_v2 = vld [vmem:[%s2292_s0 + $0x20] sm:$0xff]  ;;  %v1953_v28 = vand.u32 127, %v1169_v22 }
  0x1d   :  { %1553 = vmatpush3.bf16.xpose.msk.msra.mxu0 %vm1693_vm1, %v1548_v24  ;;  %1589 = vmatpush3.bf16.xpose.msk.msra.mxu1 %vm1693_vm1, %v1548_v24  ;;  %v662_v3 = vld [vmem:[%s2292_s0 + $0x60] sm:$0xff]  ;;  %25 = vst [vmem:[#allocation2] sm:$0x1] %v1649_v4  ;;  %26 = vst [vmem:[#allocation4] sm:$0x1] %v1649_v4  ;;  %v655_v5 = vld [vmem:[%s2292_s0 + $0x28] sm:$0xff] }
  0x1e   :  { %1556 = vmatprep.subr.msk.bf16.mxu0 %vm1693_vm1, %v1554_v31  ;;  %1582 = vmatprep.subr.msk.bf16.mxu1 %vm1693_vm1, %v1554_v31  ;;  %v663_v6 = vld [vmem:[%s2292_s0 + $0x68] sm:$0xff]  ;;  %v656_v7 = vld [vmem:[%s2292_s0 + $0x30] sm:$0xff]  ;;  %v657_v9 = vld [vmem:[%s2292_s0 + $0x38] sm:$0xff]  ;;  %v1946_v24 = vshrl.u32 %v1169_v22, 7 }
  0x1f   :  { %976 = vperm.xlu0 %1598, %v946_v29   ;;  %1108 = vperm.xlu1 %1599, %v1079_v33   ;;  %v664_v8 = vld [vmem:[%s2292_s0 + $0x70] sm:$0xff]  ;;  %v665_v10 = vld [vmem:[%s2292_s0 + $0x78] sm:$0xff]  ;;  %v1958_v29 = vld [vmem:[%s2295_s3] ss:$0 sm:$0xff]  ;;  %s1650_s3 = smov [#allocation4]  }
  0x20   :  { %v1171_v27 = vadd.s32 8, %v1946_v24  ;;  %vm1188_vm11 = vcmp.gt.s32.totalorder %v1946_v24, %v1953_v28  ;;  %s1332_s12 = sshll.u32 %s1650_s3, 4  ;;  %s1333_s12 = int_to_ptr.vmem [resolvable:$true] %s1332_s12 }
  0x21   :  { %s1600_s15 = scalar_lea.vmem %s1333_s12, 16  ;;  %s1604_s16 = scalar_lea.vmem %s1333_s12, 32 }
  0x22   :  { %vm1189_vm4 = vcmp.gt.s32.totalorder %v1171_v27, %v1953_v28  ;;  %p1601_p0 = scmp.ne.s32.totalorder %s1333_s12, %s1600_s15  ;;  %p1605_p1 = scmp.lt.s32.totalorder %s1333_s12, %s1333_s12 }
  0x23   :  { %979 = vperm.xlu0 %1598, %v947_v32   ;;  %1111 = vperm.xlu1 %1599, %v1080_v37   ;;  %p1606_p2 = scmp.lt.s32.totalorder %s1604_s16, %s1600_s15 }
  0x25   :  { %1559 = vmatpush3.bf16.xpose.msk.msra.mxu0 %vm1693_vm1, %v1554_v31  ;;  %1590 = vmatpush3.bf16.xpose.msk.msra.mxu1 %vm1693_vm1, %v1554_v31  ;;  %p1607_p3 = por %p1606_p2, %p1605_p1 }
  0x26   :  { %1562 = vmatprep.subr.msk.bf16.mxu0 %vm1693_vm1, %v1560_v38  ;;  %1583 = vmatprep.subr.msk.bf16.mxu1 %vm1693_vm1, %v1560_v38 }
  0x27   :  { %982 = vperm.xlu0 %1598, %v948_v36   ;;  %1114 = vperm.xlu1 %1599, %v1081_v40   ;;  %p1608_p4 = pnand %p1607_p3, %p1601_p0 }
  0x2b   :  { %985 = vperm.xlu0 %1598, %v949_v39   ;;  %1117 = vperm.xlu1 %1599, %v1082_v44  }
  0x2d   :  { %1565 = vmatpush3.bf16.xpose.msk.msra.mxu0 %vm1693_vm1, %v1560_v38  ;;  %1591 = vmatpush3.bf16.xpose.msk.msra.mxu1 %vm1693_vm1, %v1560_v38 }
  0x2e   :  { %1568 = vmatprep.subr.msk.bf16.mxu0 %vm1693_vm1, %v1566_v45  ;;  %1584 = vmatprep.subr.msk.bf16.mxu1 %vm1693_vm1, %v1566_v45 }
  0x2f   :  { %988 = vperm.xlu0 %1598, %v950_v43   ;;  %1120 = vperm.xlu1 %1599, %v1083_v47  }
  0x33   :  { %991 = vperm.xlu0 %1598, %v951_v46   ;;  %1123 = vperm.xlu1 %1599, %v1084_v51  }
  0x35   :  { %1571 = vmatpush3.bf16.xpose.msk.msra.mxu0 %vm1693_vm1, %v1566_v45  ;;  %1592 = vmatpush3.bf16.xpose.msk.msra.mxu1 %vm1693_vm1, %v1566_v45 }
  0x36   :  { %1574 = vmatprep.subr.msk.bf16.mxu0 %vm1693_vm1, %v1572_v52  ;;  %1585 = vmatprep.subr.msk.bf16.mxu1 %vm1693_vm1, %v1572_v52 }
  0x37   :  { %994 = vperm.xlu0 %1598, %v952_v50   ;;  %1126 = vperm.xlu1 %1599, %v1085_v54  }
  0x3b   :  { %997 = vperm.xlu0 %1598, %v953_v53   ;;  %1129 = vperm.xlu1 %1599, %v1086_v56  }
  0x3d   :  { %1577 = vmatpush3.bf16.xpose.msk.msra.mxu0 %vm1693_vm1, %v1572_v52  ;;  %1593 = vmatpush3.bf16.xpose.msk.msra.mxu1 %vm1693_vm1, %v1572_v52 }
  0x3f   :  { %1000 = vperm.xlu0 %1598, %v954_v55   ;;  %1132 = vperm.xlu1 %1599, %v1087_v57   ;;  %v1173_v57 = vadd.s32 24, %v1946_v24 }
  0x43   :  { %1003 = vperm.xlu0 %1598, %v955_v58   ;;  %1135 = vperm.xlu1 %1599, %v1088_v63  }
  0x44   :  { %1507 = vmatmul.mubr.msk.f32.vlgmr.msra.gmra.mrb[0].mxu0 %vm682_vm0, %v651_v59  ;;  %1519 = vmatmul.mubr.msk.f32.vlgmr.msra.gmra.mrb[0].mxu1 %vm682_vm0, %v659_v60 }
  0x45   :  { %1509 = vmatprep.mubr.msk.f32.mxu0 %vm682_vm0, %v652_v61  ;;  %1521 = vmatprep.mubr.msk.f32.mxu1 %vm682_vm0, %v660_v62  ;;  %v1172_v62 = vadd.s32 16, %v1946_v24 }
  0x48   :  { %1510 = vmatmul.mubr.msk.f32.gmra.mrb[2].mxu0 %vm682_vm0, %v653_v0  ;;  %1522 = vmatmul.mubr.msk.f32.gmra.mrb[2].mxu1 %vm682_vm0, %v661_v1 }
  0x49   :  { %1512 = vmatprep.mubr.msk.f32.mxu0 %vm682_vm0, %v654_v2  ;;  %1524 = vmatprep.mubr.msk.f32.mxu1 %vm682_vm0, %v662_v3 }
  0x4c   :  { %1513 = vmatmul.mubr.msk.f32.gmra.mrb[4].mxu0 %vm682_vm0, %v655_v5  ;;  %1525 = vmatmul.mubr.msk.f32.gmra.mrb[4].mxu1 %vm682_vm0, %v663_v6 }
  0x4d   :  { %1515 = vmatprep.mubr.msk.f32.mxu0 %vm682_vm0, %v656_v7  ;;  %1527 = vmatprep.mubr.msk.f32.mxu1 %vm682_vm0, %v664_v8 }
  0x50   :  { %1516 = vmatmul.mubr.msk.f32.gmra.mrb[6].mxu0 %vm682_vm0, %v657_v9  ;;  %1528 = vmatmul.mubr.msk.f32.gmra.mrb[6].mxu1 %vm682_vm0, %v665_v10  ;;  %v1175_v10 = vadd.s32 40, %v1946_v24 }
  0x86   :  { %v959_v11 = vpop.permute.xlu0 %958  ;;  %v1932_v12 = vpop.permute.xlu1 %964 }
  0x87   :  { %vm1009_vm10 = vcmp.ne.s32.totalorder %v959_v11, %v1958_v29 }
  0x8a   :  { %v962_v13 = vpop.permute.xlu0 %961  ;;  %v1091_v14 = vpop.permute.xlu1 %1090 }
  0x8b   :  { %vm1010_vm0 = vcmp.ne.s32.totalorder %v962_v13, %v1958_v29  ;;  %vm1137_vm12 = vcmp.eq.s32.totalorder %v1091_v14, 1 }
  0x8e   :  { %v1094_v15 = vpop.permute.xlu0 %1093  ;;  %v1934_v16 = vpop.permute.xlu1 %1096 }
  0x8f   :  { %vm1138_vm5 = vcmp.eq.s32.totalorder %v1094_v15, 1 }
  0x92   :  { %v968_v17 = vpop.permute.xlu0 %967  ;;  %v1936_v18 = vpop.permute.xlu1 %1099 }
  0x93   :  { %vm1012_vm3 = vcmp.ne.s32.totalorder %v968_v17, %v1958_v29 }
  0x96   :  { %v1938_v19 = vpop.permute.xlu0 %970  ;;  %v1940_v20 = vpop.permute.xlu1 %1102 }
  0x9a   :  { %v1942_v21 = vpop.permute.xlu0 %973  ;;  %v1944_v23 = vpop.permute.xlu1 %1105 }
  0x9e   :  { %v1948_v25 = vpop.permute.xlu0 %976  ;;  %v1950_v26 = vpop.permute.xlu1 %1108 }
  0xa2   :  { %v1965_v35 = vpop.permute.xlu0 %979  ;;  %v1974_v41 = vpop.permute.xlu1 %1111 }
  0xa6   :  { %v1989_v48 = vpop.permute.xlu0 %982  ;;  %v1995_v52 = vpop.permute.xlu1 %1114 }
  0xaa   :  { %v986_v60 = vpop.permute.xlu0 %985  ;;  %v2007_v63 = vpop.permute.xlu1 %1117 }
  0xae   :  { %v2014_v1 = vpop.permute.xlu0 %988  ;;  %v2017_v3 = vpop.permute.xlu1 %1120 }
 0x117   :  { %v1508_v30 = vpop.f32.mrb[0].mxu0  ;;  %v1960_v31 = vpop.f32.mrb[0].mxu1 }
 0x118   :  { %v925_v32 = vsub.f32 0.4, %v1508_v30  ;;  %v845_v33 = vpop.f32.mrb[1].mxu0  ;;  %v1962_v34 = vpop.f32.mrb[1].mxu1  ;;  %v933_v2 = vsub.f32 0.4, %v1960_v31 }
 0x119   :  { %v924_v36 = vsub.f32 0.4, %v845_v33  ;;  %v932_v5 = vsub.f32 0.4, %v1962_v34  ;;  %v1185_v34 = vadd.s32 120, %v1946_v24 }
 0x11a   :  { %vm1026_vm1 = vcmp.gt.f32.partialorder %v925_v32, 0.0 }
 0x11b   :  { %vm1042_vm6 = vmand %vm1010_vm0, %vm1026_vm1  ;;  %v1968_v37 = vpop.f32.mrb[2].mxu0  ;;  %v1970_v38 = vpop.f32.mrb[2].mxu1  ;;  %vm1025_vm9 = vcmp.gt.f32.partialorder %v924_v36, 0.0  ;;  %vm1140_vm1 = vcmp.eq.s32.totalorder %v1936_v18, 1 }
 0x11c   :  { %vm1154_vm7 = vmand %vm1042_vm6, %vm1138_vm5  ;;  %v855_v39 = vpop.f32.mrb[3].mxu0  ;;  %v1972_v40 = vpop.f32.mrb[3].mxu1  ;;  %v927_v45 = vsub.f32 0.4, %v1968_v37  ;;  %vm1191_vm5 = vcmp.gt.s32.totalorder %v1173_v57, %v1953_v28  ;;  %v935_v27 = vsub.f32 0.4, %v1970_v38 }
 0x11d   :  { %vm1205_vm8 = vmand %vm1154_vm7, %vm1189_vm4  ;;  %v926_v59 = vsub.f32 0.4, %v855_v39  ;;  %vm1011_vm7 = vcmp.ne.s32.totalorder %v1932_v12, %v1958_v29  ;;  %v992_v12 = vpop.permute.xlu0 %991  ;;  %v1124_v18 = vpop.permute.xlu1 %1123  ;;  %v1179_v37 = vadd.s32 72, %v1946_v24  ;;  %v1181_v57 = vadd.s32 88, %v1946_v24 }
 0x11e   :  { %v1427_v44 = vsel %vm1205_vm8, 1.0, %v1649_v4  ;;  %vm1041_vm13 = vmand %vm1009_vm10, %vm1025_vm9  ;;  %vm1028_vm2 = vcmp.gt.f32.partialorder %v927_v45, 0.0  ;;  %vm1190_vm9 = vcmp.gt.s32.totalorder %v1172_v62, %v1953_v28  ;;  %vm1139_vm10 = vcmp.eq.s32.totalorder %v1934_v16, 1 }
 0x11f   :  { %v1976_v42 = vpop.f32.mrb[4].mxu0  ;;  %v1978_v43 = vpop.f32.mrb[4].mxu1  ;;  %vm1153_vm14 = vmand %vm1041_vm13, %vm1137_vm12  ;;  %v1254_v49 = vmul.f32 %v1427_v44, %v925_v32  ;;  %vm1027_vm6 = vcmp.gt.f32.partialorder %v926_v59, 0.0  ;;  %v1174_v16 = vadd.s32 32, %v1946_v24 }
 0x120   :  { %v1985_v46 = vpop.f32.mrb[5].mxu0  ;;  %v1987_v47 = vpop.f32.mrb[5].mxu1  ;;  %vm1204_vm15 = vmand %vm1153_vm14, %vm1188_vm11  ;;  %v929_v0 = vsub.f32 0.4, %v1976_v42  ;;  %v2320_v42 = vmov 0 }
 0x121   :  { %v1426_v53 = vsel %vm1204_vm15, 1.0, %v1649_v4  ;;  %vm1044_vm0 = vmand %vm1012_vm3, %vm1028_vm2  ;;  %vm1014_vm15 = vcmp.ne.s32.totalorder %v1942_v21, %v1958_v29  ;;  %v928_v11 = vsub.f32 0.4, %v1985_v46  ;;  %vm1034_vm2 = vcmp.gt.f32.partialorder %v933_v2, 0.0  ;;  %v2057_v33 = vpop.permute.xlu0 %994 }
 0x122   :  { %v1253_v55 = vmul.f32 %v1426_v53, %v924_v36  ;;  %v1293_v56 = vadd.f32 %v1427_v44, %v1426_v53  ;;  %vm1156_vm4 = vmand %vm1044_vm0, %vm1140_vm1  ;;  %vm1030_vm14 = vcmp.gt.f32.partialorder %v929_v0, 0.0  ;;  %vm1142_vm0 = vcmp.eq.s32.totalorder %v1944_v23, 1 }
 0x123   :  { %v1991_v50 = vpop.f32.mrb[6].mxu0  ;;  %v1993_v51 = vpop.f32.mrb[6].mxu1  ;;  %vm1207_vm8 = vmand %vm1156_vm4, %vm1191_vm5  ;;  %vm1033_vm1 = vcmp.gt.f32.partialorder %v932_v5, 0.0  ;;  %vm1018_vm4 = vcmp.ne.s32.totalorder %v986_v60, %v1958_v29  ;;  %v1178_v23 = vadd.s32 64, %v1946_v24  ;;  %v934_v36 = vsub.f32 0.4, %v1972_v40 }
 0x124   :  { %v1998_v54 = vpop.f32.mrb[7].mxu0  ;;  %v2001_v58 = vpop.f32.mrb[7].mxu1  ;;  %v1269_v61 = vadd.f32 %v1254_v49, %v1253_v55  ;;  %vm1043_vm11 = vmand %vm1011_vm7, %vm1027_vm6  ;;  %v1429_v6 = vsel %vm1207_vm8, 1.0, %v1649_v4  ;;  %vm1193_vm6 = vcmp.gt.s32.totalorder %v1175_v10, %v1953_v28  ;;  %vm1017_vm7 = vcmp.ne.s32.totalorder %v1989_v48, %v1958_v29 }
 0x125   :  { %vm1155_vm12 = vmand %vm1043_vm11, %vm1139_vm10  ;;  %v1256_v13 = vmul.f32 %v1429_v6, %v927_v45  ;;  %vm1013_vm11 = vcmp.ne.s32.totalorder %v1938_v19, %v1958_v29  ;;  %v931_v32 = vsub.f32 0.4, %v1991_v50  ;;  %v1177_v55 = vadd.s32 56, %v1946_v24  ;;  %v998_v60 = vpop.permute.xlu0 %997 }
 0x126   :  { %vm1206_vm13 = vmand %vm1155_vm12, %vm1190_vm9  ;;  %vm1029_vm9 = vcmp.gt.f32.partialorder %v928_v11, 0.0  ;;  %v2326_v10 = vmov 0  ;;  %v1184_v50 = vadd.s32 112, %v1946_v24 }
 0x127   :  { %v1428_v7 = vsel %vm1206_vm13, 1.0, %v1649_v4  ;;  %vm1046_vm3 = vmand %vm1014_vm15, %vm1030_vm14  ;;  %vm1192_vm13 = vcmp.gt.s32.totalorder %v1174_v16, %v1953_v28  ;;  %vm1141_vm14 = vcmp.eq.s32.totalorder %v1940_v20, 1  ;;  %v2071_v20 = vpop.permute.xlu1 %1126  ;;  %v1183_v16 = vadd.s32 104, %v1946_v24 }
 0x128   :  { %v1255_v8 = vmul.f32 %v1428_v7, %v926_v59  ;;  %v1294_v9 = vadd.f32 %v1428_v7, %v1293_v56  ;;  %vm1158_vm5 = vmand %vm1046_vm3, %vm1142_vm0  ;;  %vm1145_vm3 = vcmp.eq.s32.totalorder %v1995_v52, 1  ;;  %vm1146_vm0 = vcmp.eq.s32.totalorder %v2007_v63, 1 }
 0x129   :  { %vm2038_vm8 = vmand %vm1018_vm4, %vm1034_vm2  ;;  %vm2066_vm4 = vcmp.gt.f32.partialorder %v935_v27, 0.0  ;;  %v930_v59 = vsub.f32 0.4, %v1998_v54  ;;  %v1176_v63 = vadd.s32 48, %v1946_v24 }
 0x12a   :  { %v1270_v14 = vadd.f32 %v1269_v61, %v1255_v8  ;;  %v1295_v15 = vadd.f32 %v1429_v6, %v1294_v9  ;;  %vm2042_vm10 = vmand %vm1017_vm7, %vm1033_vm1  ;;  %vm1196_vm1 = vcmp.gt.s32.totalorder %v1178_v23, %v1953_v28  ;;  %v937_v6 = vsub.f32 0.4, %v1978_v43  ;;  %v1001_v9 = vpop.permute.xlu0 %1000 }
 0x12b   :  { %vm2050_vm12 = vmand %vm1158_vm5, %vm1193_vm6  ;;  %vm1020_vm6 = vcmp.ne.s32.totalorder %v992_v12, %v1958_v29  ;;  %v1180_v8 = vadd.s32 80, %v1946_v24 }
 0x12c   :  { %v1271_v17 = vadd.f32 %v1270_v14, %v1256_v13  ;;  %vm1045_vm15 = vmand %vm1013_vm11, %vm1029_vm9  ;;  %v1431_v44 = vsel %vm2050_vm12, 1.0, %v1649_v4  ;;  %vm2085_vm9 = vcmp.gt.f32.partialorder %v931_v32, 0.0  ;;  %vm1016_vm12 = vcmp.ne.s32.totalorder %v1965_v35, %v1958_v29 }
 0x12d   :  { %vm1157_vm2 = vmand %vm1045_vm15, %vm1141_vm14  ;;  %vm1019_vm14 = vcmp.ne.s32.totalorder %v2014_v1, %v1958_v29  ;;  %v1258_v61 = vmul.f32 %v1431_v44, %v929_v0  ;;  %v936_v0 = vsub.f32 0.4, %v1987_v47  ;;  %v1130_v1 = vpop.permute.xlu1 %1129  ;;  %v939_v13 = vsub.f32 0.4, %v1993_v51 }
 0x12e   :  { %vm1208_vm5 = vmand %vm1157_vm2, %vm1192_vm13  ;;  %vm1197_vm13 = vcmp.gt.s32.totalorder %v1179_v37, %v1953_v28  ;;  %v1004_v30 = vpop.permute.xlu0 %1003 }
 0x12f   :  { %vm2075_vm7 = vmand %vm2042_vm10, %vm1145_vm3  ;;  %v1430_v45 = vsel %vm1208_vm5, 1.0, %v1649_v4  ;;  %vm2097_vm10 = vcmp.gt.f32.partialorder %v934_v36, 0.0  ;;  %vm1144_vm3 = vcmp.eq.s32.totalorder %v1974_v41, 1 }
 0x130   :  { %vm2091_vm11 = vmand %vm2038_vm8, %vm1146_vm0  ;;  %v1257_v52 = vmul.f32 %v1430_v45, %v928_v11  ;;  %v1296_v53 = vadd.f32 %v1430_v45, %v1295_v15 }
 0x131   :  { %vm2107_vm8 = vmand %vm1020_vm6, %vm2066_vm4  ;;  %vm1148_vm4 = vcmp.eq.s32.totalorder %v1124_v18, 1  ;;  %vm1195_vm6 = vcmp.gt.s32.totalorder %v1177_v55, %v1953_v28  ;;  %v1133_v11 = vpop.permute.xlu1 %1132 }
 0x132   :  { %vm2119_vm15 = vmand %vm2075_vm7, %vm1196_vm1  ;;  %v1272_v62 = vadd.f32 %v1271_v17, %v1257_v52  ;;  %v1297_v54 = vadd.f32 %v1431_v44, %v1296_v53  ;;  %vm1147_vm7 = vcmp.eq.s32.totalorder %v2017_v3, 1 }
 0x133   :  { %vm1048_vm2 = vmand %vm1016_vm12, %vm2085_vm9  ;;  %v1434_v21 = vsel %vm2119_vm15, 1.0, %v1649_v4 }
 0x134   :  { %vm1051_vm0 = vmand %vm1019_vm14, %vm2097_vm10  ;;  %v1273_v41 = vadd.f32 %v1272_v62, %v1258_v61  ;;  %vm1199_vm10 = vcmp.gt.s32.totalorder %v1181_v57, %v1953_v28 }
 0x135   :  { %vm2135_vm1 = vmand %vm2091_vm11, %vm1197_vm13  ;;  %vm1031_vm11 = vcmp.gt.f32.partialorder %v930_v59, 0.0  ;;  %vm1015_vm13 = vcmp.ne.s32.totalorder %v1948_v25, %v1958_v29  ;;  %v938_v25 = vsub.f32 0.4, %v2001_v58  ;;  %v1136_v48 = vpop.permute.xlu1 %1135 }
 0x136   :  { %v2321_v42 = vsel %vm2135_vm1, 4294967295, %v2320_v42  ;;  %vm1160_vm5 = vmand %vm1048_vm2, %vm1144_vm3  ;;  %vm1143_vm2 = vcmp.eq.s32.totalorder %v1950_v26, 1  ;;  %vm1198_vm1 = vcmp.gt.s32.totalorder %v1180_v8, %v1953_v28  ;;  %v1182_v26 = vadd.s32 96, %v1946_v24 }
 0x137   :  { %vm1164_vm9 = vmand %vm2107_vm8, %vm1148_vm4  ;;  %vm1194_vm8 = vcmp.gt.s32.totalorder %v1176_v63, %v1953_v28 }
 0x138   :  { %vm2146_vm12 = vmand %vm1051_vm0, %vm1147_vm7  ;;  %vm1037_vm0 = vcmp.gt.f32.partialorder %v936_v0, 0.0  ;;  %vm1038_vm7 = vcmp.gt.f32.partialorder %v937_v6, 0.0  ;;  %vm1200_vm15 = vcmp.gt.s32.totalorder %v1182_v26, %v1953_v28 }
 0x139   :  { %vm2153_vm14 = vmand %vm1160_vm5, %vm1195_vm6  ;;  %vm1021_vm6 = vcmp.ne.s32.totalorder %v2057_v33, %v1958_v29 }
 0x13a   :  { %vm2159_vm3 = vmand %vm1164_vm9, %vm1199_vm10  ;;  %vm1022_vm10 = vcmp.ne.s32.totalorder %v998_v60, %v1958_v29  ;;  %v1433_v12 = vsel %vm2153_vm14, 1.0, %v1649_v4 }
 0x13b   :  { %v2327_v10 = vsel %vm2159_vm3, 4294967295, %v2326_v10  ;;  %vm1047_vm4 = vmand %vm1015_vm13, %vm1031_vm11  ;;  %vm1149_vm13 = vcmp.eq.s32.totalorder %v2071_v20, 1  ;;  %v1260_v37 = vmul.f32 %v1433_v12, %v931_v32  ;;  %v1261_v32 = vmul.f32 %v1434_v21, %v932_v5 }
 0x13c   :  { %vm1159_vm5 = vmand %vm1047_vm4, %vm1143_vm2  ;;  %vm2197_vm2 = vcmp.gt.f32.partialorder %v938_v25, 0.0 }
 0x13d   :  { %vm1210_vm9 = vmand %vm1159_vm5, %vm1194_vm8  ;;  %vm1150_vm8 = vcmp.eq.s32.totalorder %v1130_v1, 1  ;;  %vm1024_vm5 = vcmp.ne.s32.totalorder %v1004_v30, %v1958_v29 }
 0x13e   :  { %vm1053_vm3 = vmand %vm1021_vm6, %vm1037_vm0  ;;  %v1432_v14 = vsel %vm1210_vm9, 1.0, %v1649_v4  ;;  %vm1201_vm6 = vcmp.gt.s32.totalorder %v1183_v16, %v1953_v28 }
 0x13f   :  { %vm2178_vm11 = vmand %vm1022_vm10, %vm1038_vm7  ;;  %v1259_v17 = vmul.f32 %v1432_v14, %v930_v59  ;;  %v1298_v18 = vadd.f32 %v1432_v14, %v1297_v54  ;;  %vm1151_vm10 = vcmp.eq.s32.totalorder %v1133_v11, 1  ;;  %v1292_v11 = vld [vmem:[#allocation4] sm:$0x1] }
 0x140   :  { %vm2191_vm14 = vmand %vm2146_vm12, %vm1198_vm1  ;;  %vm1023_vm1 = vcmp.ne.s32.totalorder %v1001_v9, %v1958_v29  ;;  %vm2336_vm12 = vnez %v2321_v42 }
 0x141   :  { %vm2201_vm0 = vmand %vm1053_vm3, %vm1149_vm13  ;;  %v1274_v19 = vadd.f32 %v1273_v41, %v1259_v17  ;;  %v1299_v20 = vadd.f32 %v1433_v12, %v1298_v18  ;;  %v1435_v39 = vsel %vm2336_vm12, 1.0, %v1649_v4  ;;  %vm1040_vm3 = vcmp.gt.f32.partialorder %v939_v13, 0.0  ;;  %v1252_v12 = vld [vmem:[#allocation2] sm:$0x1] }
 0x142   :  { %vm2214_vm4 = vmand %vm2178_vm11, %vm1150_vm8  ;;  %v1436_v49 = vsel %vm2191_vm14, 1.0, %v1649_v4  ;;  %v1262_v5 = vmul.f32 %v1435_v39, %v933_v2  ;;  %vm2339_vm13 = vnez %v2327_v10  ;;  %vm1202_vm14 = vcmp.gt.s32.totalorder %v1184_v50, %v1953_v28 }
 0x143   :  { %v1275_v45 = vadd.f32 %v1274_v19, %v1260_v37  ;;  %v1300_v46 = vadd.f32 %v1434_v21, %v1299_v20  ;;  %vm1055_vm7 = vmand %vm1023_vm1, %vm2197_vm2  ;;  %v1437_v53 = vsel %vm2339_vm13, 1.0, %v1649_v4  ;;  %vm1152_vm2 = vcmp.eq.s32.totalorder %v1136_v48, 1 }
 0x144   :  { %vm1216_vm9 = vmand %vm2201_vm0, %vm1200_vm15  ;;  %v1263_v55 = vmul.f32 %v1436_v49, %v934_v36  ;;  %vm1203_vm1 = vcmp.gt.s32.totalorder %v1185_v34, %v1953_v28  ;;  %v1264_v56 = vmul.f32 %v1437_v53, %v935_v27 }
 0x145   :  { %vm1056_vm11 = vmand %vm1024_vm5, %vm1040_vm3  ;;  %v1276_v29 = vadd.f32 %v1275_v45, %v1261_v32  ;;  %v1301_v52 = vadd.f32 %v1435_v39, %v1300_v46  ;;  %v1438_v2 = vsel %vm1216_vm9, 1.0, %v1649_v4 }
 0x146   :  { %vm1167_vm8 = vmand %vm1055_vm7, %vm1151_vm10  ;;  %v1265_v40 = vmul.f32 %v1438_v2, %v936_v0 }
 0x147   :  { %vm1217_vm0 = vmand %vm2214_vm4, %vm1201_vm6  ;;  %v1277_v24 = vadd.f32 %v1276_v29, %v1262_v5  ;;  %v1302_v31 = vadd.f32 %v1436_v49, %v1301_v52 }
 0x148   :  { %vm1168_vm15 = vmand %vm1056_vm11, %vm1152_vm2  ;;  %v1439_v60 = vsel %vm1217_vm0, 1.0, %v1649_v4 }
 0x149   :  { %vm1218_vm12 = vmand %vm1167_vm8, %vm1202_vm14  ;;  %v1278_v57 = vadd.f32 %v1277_v24, %v1263_v55  ;;  %v1303_v59 = vadd.f32 %v1437_v53, %v1302_v31  ;;  %v1266_v62 = vmul.f32 %v1439_v60, %v937_v6 }
 0x14a   :  { %vm1219_vm3 = vmand %vm1168_vm15, %vm1203_vm1  ;;  %v1440_v61 = vsel %vm1218_vm12, 1.0, %v1649_v4 }
 0x14b   :  { %v1279_v36 = vadd.f32 %v1278_v57, %v1264_v56  ;;  %v1304_v35 = vadd.f32 %v1438_v2, %v1303_v59  ;;  %v1441_v38 = vsel %vm1219_vm3, 1.0, %v1649_v4  ;;  %v1267_v27 = vmul.f32 %v1440_v61, %v938_v25 }
 0x14c   :  { %v1268_v47 = vmul.f32 %v1441_v38, %v939_v13 }
 0x14d   :  { %v1280_v28 = vadd.f32 %v1279_v36, %v1265_v40  ;;  %v1305_v54 = vadd.f32 %v1439_v60, %v1304_v35 }
 0x14f   :  { %v1281_v63 = vadd.f32 %v1280_v28, %v1266_v62  ;;  %v1306_v42 = vadd.f32 %v1440_v61, %v1305_v54 }
 0x151   :  { %v1282_v0 = vadd.f32 %v1281_v63, %v1267_v27  ;;  %v1307_v41 = vadd.f32 %v1441_v38, %v1306_v42 }
 0x153   :  { %v1283_v1 = vadd.f32 %v1282_v0, %v1268_v47  ;;  %v1308_v7 = vrot.slane %v1307_v41, 4 }
 0x155   :  { %v1284_v8 = vrot.slane %v1283_v1, 4  ;;  %v1309_v3 = vadd.f32 %v1308_v7, %v1307_v41 }
 0x157   :  { %v1285_v43 = vadd.f32 %v1284_v8, %v1283_v1  ;;  %v1310_v6 = vrot.slane %v1309_v3, 2 }
 0x159   :  { %v1286_v9 = vrot.slane %v1285_v43, 2  ;;  %v1311_v10 = vadd.f32 %v1310_v6, %v1309_v3 }
 0x15b   :  { %v1287_v26 = vadd.f32 %v1286_v9, %v1285_v43  ;;  %v1312_v4 = vrot.slane %v1311_v10, 1 }
 0x15d   :  { %v1288_v58 = vrot.slane %v1287_v26, 1  ;;  %v1313_v25 = vadd.f32 %v1312_v4, %v1311_v10 }
 0x15f   :  { %v1289_v51 = vadd.f32 %v1288_v58, %v1287_v26  ;;  %v1314_v13 = vadd.f32 %v1313_v25, %v1292_v11 }
 0x161   :  { %v1290_v14 = vadd.f32 %v1289_v51, %v1252_v12  ;;  %1315 = vst [vmem:[#allocation4] sm:$0x1] %v1314_v13 }
 0x162   :  { %1611 = shalt.err (!%p1608_p4)
}
 0x163   :  { %s1612_s18 = scalar_lea.hbm %s2297_s5, 16 }
 0x164   :  { %p1613_p5 = scmp.ne.s32.totalorder %s2297_s5, %s1612_s18  ;;  %p1616_p6 = scmp.lt.u32.totalorder %s1612_s18, %s2297_s5 }
 0x166   :  { %p1618_p7 = pnand %p1616_p6, %p1613_p5 }
 0x168   :  { %1621 = shalt.err (!%p1618_p7)
}
 0x169   :  { %1335 = dma.vmem_to_hbm [thread:$0]  %s1333_s12, 16, %s2297_s5, [#allocation5]   ;;  %1291 = vst [vmem:[#allocation2] sm:$0x1] %v1290_v14 }
 0x16a   :  { %s1622_s25 = scalar_lea.vmem %s2260_s14, 16  ;;  %s1626_s26 = scalar_lea.vmem %s2260_s14, 32 }
 0x16b   :  { %p1623_p8 = scmp.ne.s32.totalorder %s2260_s14, %s1622_s25  ;;  %p1627_p9 = scmp.lt.s32.totalorder %s2260_s14, %s2260_s14 }
 0x16c   :  { %p1628_p10 = scmp.lt.s32.totalorder %s1626_s26, %s1622_s25 }
 0x16e   :  { %p1629_p11 = por %p1628_p10, %p1627_p9 }
 0x170   :  { %p1630_p12 = pnand %p1629_p11, %p1623_p8 }
 0x172   :  { %1633 = shalt.err (!%p1630_p12)
}
 0x173   :  { %s1634_s29 = scalar_lea.hbm %s2296_s4, 16 }
 0x174   :  { %p1635_p13 = scmp.ne.s32.totalorder %s2296_s4, %s1634_s29  ;;  %p1638_p0 = scmp.lt.u32.totalorder %s1634_s29, %s2296_s4 }
 0x176   :  { %p1640_p1 = pnand %p1638_p0, %p1635_p13 }
 0x178   :  { %1643 = shalt.err (!%p1640_p1)
}
 0x179   :  { %1325 = dma.vmem_to_hbm [thread:$0]  %s2260_s14, 16, %s2296_s4, [#allocation3]  }
 0x17a   :  { %1644 = dma.done.wait [#allocation3], 16  }
 0x17b   :  { %1645 = vsyncadd [#allocation3], 4294967280 }
 0x17c   :  { %1646 = dma.done.wait [#allocation5], 16  }
 0x17d   :  { %1647 = vsyncadd [#allocation5], 4294967280 }
 0x17e   :  { %1342 = vsyncpa [#allocation3], 1 }
 0x17f   :  { %1343 = vsyncpa [#allocation5], 1 }

</bundles_post_ra>
